<compile_context>
chip_gen: v7x
topology: tpu7x:2x2x1
jax: 0.10.0
libtpu: 0.0.40
codegen_flags: <defaults>
</compile_context>

<pallas_src>
import functools

import jax
import jax.numpy as jnp
from jax.experimental import pallas as pl
from jax.experimental.pallas import tpu as pltpu


# Mirrors the PyTorch module: unknown activation strings fall back to ReLU.
_ACTIVATIONS = {
    "relu": lambda y: jnp.maximum(y, 0.0),
    "gelu": jax.nn.gelu,
    "silu": jax.nn.silu,
}


def _make_kernel(activation):
    act = _ACTIVATIONS.get(activation, _ACTIVATIONS["relu"])

    def kernel(w_ref, p_ref, o_ref):
        # w_ref: (R*C_out, R*KC_pad)  bf16, resident across all M tiles
        # p_ref: (R*KC_pad, TILE_M)   bf16, streamed per M tile
        # o_ref: (R*C_out, TILE_M)    lane-dense output stripe
        y = jnp.dot(w_ref[...], p_ref[...], preferred_element_type=jnp.float32)
        o_ref[...] = act(y).astype(o_ref.dtype)

    return kernel


def _pick_tile_m(M):
    for t in (8192, 4096, 2048, 1024, 512, 256, 128):
        if M % t == 0:
            return t
    return M  # small / odd M: single full block (allowed when == full dim)


@functools.partial(jax.jit, static_argnums=(2, 3))
def multi_scale_conv(x, w_stacked, rates, activation="relu"):
    """x: (N, C_in, H, W) f32; w_stacked: (R, C_out, C_in, KH, KW) f32.

    Equivalent to MultiScaleConv.forward with stride=1, bias=False.
    """
    N, C_in, H, W = x.shape
    R, C_out, _, KH, KW = w_stacked.shape
    assert R == len(rates)
    if KH % 2 != 1 or KW % 2 != 1:
        # TODO(synk): even-kernel branches change spatial size -> would need
        # the bilinear F.interpolate fallback; not implemented.
        raise NotImplementedError("multi_scale_conv requires odd kernel size")

    compute_dtype = jnp.bfloat16
    M = N * H * W
    KC = KH * KW * C_in
    KC_pad = (KC + 15) // 16 * 16          # bf16 sublane packing multiple
    RC = R * C_out
    RKC = R * KC_pad

    # --- pad once with the max halo over all branches (stride=1, odd K) -----
    pads_h = [(KH - 1) * r // 2 for r in rates]
    pads_w = [(KW - 1) * r // 2 for r in rates]
    pad_lo_h, pad_lo_w = max(pads_h), max(pads_w)
    pad_hi_h = max((KH - 1) * r - p for r, p in zip(rates, pads_h))
    pad_hi_w = max((KW - 1) * r - p for r, p in zip(rates, pads_w))
    xp = jnp.pad(x.astype(compute_dtype),
                 ((0, 0), (0, 0), (pad_lo_h, pad_hi_h), (pad_lo_w, pad_hi_w)))

    # Single upfront transpose; every tap below is a pure strided slice.
    xt = jnp.transpose(xp, (1, 0, 2, 3))            # (C_in, N, Hp, Wp) bf16

    # --- im2col: per-rate (KC_pad, M) blocks, row order (kh, kw, c) ---------
    rate_blocks = []
    for ri, r in enumerate(rates):
        ph, pw = pads_h[ri], pads_w[ri]
        taps = []
        for kh in range(KH):
            for kw in range(KW):
                h0 = pad_lo_h - ph + kh * r
                w0 = pad_lo_w - pw + kw * r
                taps.append(xt[:, :, h0:h0 + H, w0:w0 + W].reshape(C_in, M))
        blk = jnp.concatenate(taps, axis=0)          # (KC, M)
        if KC_pad != KC:
            blk = jnp.pad(blk, ((0, KC_pad - KC), (0, 0)))
        rate_blocks.append(blk)
    patches = jnp.concatenate(rate_blocks, axis=0)   # (R*KC_pad, M) bf16

    # --- block-diagonal weight: all R branches in one MXU matmul ------------
    w_k = jnp.transpose(w_stacked, (0, 1, 3, 4, 2)).reshape(R, C_out, KC)
    if KC_pad != KC:
        w_k = jnp.pad(w_k, ((0, 0), (0, 0), (0, KC_pad - KC)))
    w_bd = jnp.zeros((RC, RKC), dtype=compute_dtype)
    for r in range(R):
        w_bd = w_bd.at[r * C_out:(r + 1) * C_out,
                       r * KC_pad:(r + 1) * KC_pad].set(
                           w_k[r].astype(compute_dtype))

    # --- Pallas call: grid over lane-dense M tiles, weights resident --------
    TILE_M = _pick_tile_m(M)
    num_m = M // TILE_M
    out_itemsize = jnp.dtype(x.dtype).itemsize
    tile_bytes = (RC * RKC * 2                     # resident bf16 weights
                  + 2 * RKC * TILE_M * 2           # double-buffered patch tile
                  + 2 * RC * TILE_M * out_itemsize)  # double-buffered out tile
    vmem_limit = int(min(max(2 * tile_bytes, 8 << 20), 48 << 20))

    kernel = _make_kernel(activation)
    out_flat = pl.pallas_call(
        kernel,
        out_shape=jax.ShapeDtypeStruct((RC, M), x.dtype),
        grid=(num_m,),
        in_specs=[
            pl.BlockSpec((RC, RKC), lambda m: (0, 0)),       # weights resident
            pl.BlockSpec((RKC, TILE_M), lambda m: (0, m)),   # patch stripe
        ],
        out_specs=pl.BlockSpec((RC, TILE_M), lambda m: (0, m)),
        compiler_params=pltpu.CompilerParams(
            dimension_semantics=("parallel",),
            vmem_limit_bytes=vmem_limit),
    )(w_bd, patches)

    # (R*C_out, N*H*W) -> (R*C_out, N, H, W) -> (N, R*C_out, H, W)
    out = out_flat.reshape(RC, N, H, W)
    return jnp.transpose(out, (1, 0, 2, 3))


def ref_multi_scale_conv(x, w_stacked, rates, cast=None):
    """Pure-JAX reference mirroring the PyTorch forward (relu activation).

    cast=jnp.bfloat16 reproduces the kernel's operand precision exactly.
    """
    R, C_out, C_in, KH, KW = w_stacked.shape
    lhs = x.astype(cast) if cast is not None else x
    outs = []
    for ri, r in enumerate(rates):
        rhs = w_stacked[ri].astype(cast) if cast is not None else w_stacked[ri]
        ph = (KH - 1) * r // 2
        pw = (KW - 1) * r // 2
        y = jax.lax.conv_general_dilated(
            lhs, rhs,
            window_strides=(1, 1),
            padding=((ph, ph), (pw, pw)),
            rhs_dilation=(r, r),
            dimension_numbers=("NCHW", "OIHW", "NCHW"),
            preferred_element_type=jnp.float32,
            precision=jax.lax.Precision.HIGHEST)
        outs.append(jnp.maximum(y, 0.0))
    return jnp.concatenate(outs, axis=1)


if __name__ == "__main__":
    # Module config: in_channels=4, out_channels=8, kernel_size=3,
    # dilation_rates=[1,2,3,5], activation='relu', stride=1, bias=False.
    N, C_in, H, W = 2, 4, 16, 16
    C_out, K = 8, 3
    rates = (1, 2, 3, 5)

    key = jax.random.PRNGKey(0)
    kx, kw = jax.random.split(key)
    x = jax.random.normal(kx, (N, C_in, H, W), dtype=jnp.float32)
    w_stacked = 0.1 * jax.random.normal(
        kw, (len(rates), C_out, C_in, K, K), dtype=jnp.float32)

    out = jax.block_until_ready(multi_scale_conv(x, w_stacked, rates))
    assert out.shape == (N, len(rates) * C_out, H, W), out.shape

    # Exact-precision check (same bf16 operands, f32 accumulate) ...
    ref_b = jax.block_until_ready(
        ref_multi_scale_conv(x, w_stacked, rates, cast=jnp.bfloat16))
    err_b = float(jnp.max(jnp.abs(out - ref_b)))
    assert jnp.allclose(out, ref_b, rtol=2e-3, atol=2e-3), err_b

    # ... plus a loose check against the full-f32 conv reference.
    ref_f = jax.block_until_ready(ref_multi_scale_conv(x, w_stacked, rates))
    err_f = float(jnp.max(jnp.abs(out - ref_f)))
    assert jnp.allclose(out, ref_f, rtol=5e-2, atol=5e-2), err_f

    print("KERNEL_OK")
</pallas_src>

<mosaic_0001>
module attributes {stable_mosaic.version = 11 : i64} {
  func.func @kernel(%arg0: i32, %arg1: memref<32x192xbf16, #tpu.memory_space<vmem>>, %arg2: memref<192x512xbf16, #tpu.memory_space<vmem>>, %arg3: memref<32x512xf32, #tpu.memory_space<vmem>>) attributes {dimension_semantics = [#tpu.dimension_semantics<parallel>], iteration_bounds = array<i64: 1>, scalar_prefetch = 0 : i64, scratch_operands = 0 : i64, tpu.core_type = #tpu.core_type<tc>, window_params = [{pipeline_mode = #tpu.pipeline_mode<synchronous>, transform_indices = @transform_0, window_bounds = array<i64: 32, 192>}, {transform_indices = @transform_1, window_bounds = array<i64: 192, 512>}, {transform_indices = @transform_2, window_bounds = array<i64: 32, 512>}]} {
    %c0 = arith.constant 0 : index
    %c0_0 = arith.constant 0 : index
    %0 = vector.load %arg1[%c0, %c0_0] : memref<32x192xbf16, #tpu.memory_space<vmem>>, vector<32x192xbf16>
    %c0_1 = arith.constant 0 : index
    %c0_2 = arith.constant 0 : index
    %1 = vector.load %arg2[%c0_1, %c0_2] : memref<192x512xbf16, #tpu.memory_space<vmem>>, vector<192x512xbf16>
    %cst = arith.constant dense<0.000000e+00> : vector<32x512xf32>
    %2 = tpu.matmul %0, %1, %cst {dimension_numbers = #tpu.dot_dimension_numbers<[1], [0], [0], [1], [0, 0, 1, 1], [], []>} : vector<32x192xbf16>, vector<192x512xbf16>, vector<32x512xf32> -> vector<32x512xf32>
    %cst_3 = arith.constant 0.000000e+00 : f32
    %3 = vector.broadcast %cst_3 : f32 to vector<32x512xf32>
    %4 = arith.maximumf %2, %3 : vector<32x512xf32>
    %c0_4 = arith.constant 0 : index
    %c0_5 = arith.constant 0 : index
    %5 = vector.load %arg3[%c0_4, %c0_5] : memref<32x512xf32, #tpu.memory_space<vmem>>, vector<32x512xf32>
    tpu.vector_store %arg3[%c0_4, %c0_5], %4 {strides = array<i32>} : memref<32x512xf32, #tpu.memory_space<vmem>>, vector<32x512xf32>,
    return
  }
  func.func @transform_0(%arg0: i32) -> (i32, i32) {
    %c0_i32 = arith.constant 0 : i32
    %c0_i32_0 = arith.constant 0 : i32
    %c0_i32_1 = arith.constant 0 : i32
    return %c0_i32, %c0_i32_0 : i32, i32
  }
  func.func @transform_1(%arg0: i32) -> (i32, i32) {
    %c0_i32 = arith.constant 0 : i32
    %c0_i32_0 = arith.constant 0 : i32
    return %c0_i32, %arg0 : i32, i32
  }
  func.func @transform_2(%arg0: i32) -> (i32, i32) {
    %c0_i32 = arith.constant 0 : i32
    %c0_i32_0 = arith.constant 0 : i32
    return %c0_i32, %arg0 : i32, i32
  }
}

</mosaic_0001>

<bundles_post_ra>
// kernel: multi_scale_conv.1
= control target key start
LH: loop header
LB: loop body
LE: loop exit
PB: predicated region body
PF: predicated region fallthrough
CT: control target
= control target key end

     0   :  { %vm322_vm0 = vcmask 523264   ;;  %s828_s1 = inlined_call_operand.vmem [shape: bf16[192,512], index: 1, kind: input, shape index: {}]   ;;  %s829_s0 = inlined_call_operand.vmem [shape: bf16[32,192], index: 0, kind: input, shape index: {}]   ;;  %s830_s2 = inlined_call_operand.vmem [shape: f32[32,512], index: 2, kind: output, shape index: {}]  }
   0x1   :  { %v527_v0 = vld [vmem:[%s828_s1 + $0x4] ss:$16 sps:$4 sm:$0xff]   ;;  %v529_v1 = vld [vmem:[%s828_s1 + $0xc] ss:$16 sps:$4 sm:$0xff]   ;;  %v531_v2 = vld [vmem:[%s828_s1] ss:$16 sps:$4 sm:$0xff]  }
   0x2   :  { %329 = vmatprep.subr.bf16.mxu0 %v527_v0  ;;  %v532_v3 = vld [vmem:[%s828_s1 + $0x8] ss:$16 sps:$4 sm:$0xff]   ;;  %382 = vmatprep.subr.bf16.mxu1 %v529_v1  ;;  %v533_v4 = vld [vmem:[%s828_s1 + $0x24] ss:$16 sps:$4 sm:$0xff]   ;;  %v535_v5 = vld [vmem:[%s828_s1 + $0x2c] ss:$16 sps:$4 sm:$0xff]  }
   0x3   :  { %330 = vmatpush1.bf16.msra.mxu0 %v531_v2  ;;  %383 = vmatpush1.bf16.msra.mxu1 %v532_v3  ;;  %v537_v6 = vld [vmem:[%s828_s1 + $0x20] ss:$16 sps:$4 sm:$0xff]   ;;  %v538_v7 = vld [vmem:[%s828_s1 + $0x28] ss:$16 sps:$4 sm:$0xff]   ;;  %v539_v8 = vld [vmem:[%s828_s1 + $0x44] ss:$16 sps:$4 sm:$0xff]  }
   0x4   :  { %331 = vmatprep.subr.bf16.mxu0 %v533_v4  ;;  %384 = vmatprep.subr.bf16.mxu1 %v535_v5  ;;  %v541_v9 = vld [vmem:[%s828_s1 + $0x4c] ss:$16 sps:$4 sm:$0xff]   ;;  %v543_v10 = vld [vmem:[%s828_s1 + $0x40] ss:$16 sps:$4 sm:$0xff]   ;;  %v544_v11 = vld [vmem:[%s828_s1 + $0x48] ss:$16 sps:$4 sm:$0xff]  }
   0x5   :  { %v545_v12 = vld [vmem:[%s828_s1 + $0x64] ss:$16 sps:$4 sm:$0xff]   ;;  %v547_v13 = vld [vmem:[%s828_s1 + $0x6c] ss:$16 sps:$4 sm:$0xff]   ;;  %v549_v14 = vld [vmem:[%s828_s1 + $0x60] ss:$16 sps:$4 sm:$0xff]  }
   0x6   :  { %v550_v15 = vld [vmem:[%s828_s1 + $0x68] ss:$16 sps:$4 sm:$0xff]   ;;  %v551_v16 = vld [vmem:[%s828_s1 + $0x84] ss:$16 sps:$4 sm:$0xff]   ;;  %v553_v17 = vld [vmem:[%s828_s1 + $0x8c] ss:$16 sps:$4 sm:$0xff]  }
   0x7   :  { %332 = vmatpush1.bf16.msra.mxu0 %v537_v6  ;;  %385 = vmatpush1.bf16.msra.mxu1 %v538_v7  ;;  %v555_v18 = vld [vmem:[%s828_s1 + $0x80] ss:$16 sps:$4 sm:$0xff]   ;;  %v556_v19 = vld [vmem:[%s828_s1 + $0x88] ss:$16 sps:$4 sm:$0xff]   ;;  %v557_v20 = vld [vmem:[%s828_s1 + $0xa4] ss:$16 sps:$4 sm:$0xff]  }
   0x8   :  { %333 = vmatprep.subr.bf16.mxu0 %v539_v8  ;;  %386 = vmatprep.subr.bf16.mxu1 %v541_v9  ;;  %v559_v21 = vld [vmem:[%s828_s1 + $0xac] ss:$16 sps:$4 sm:$0xff]   ;;  %v561_v22 = vld [vmem:[%s828_s1 + $0xa0] ss:$16 sps:$4 sm:$0xff]   ;;  %v562_v23 = vld [vmem:[%s828_s1 + $0xa8] ss:$16 sps:$4 sm:$0xff]  }
   0x9   :  { %v563_v24 = vld [vmem:[%s828_s1 + $0xc4] ss:$16 sps:$4 sm:$0xff]   ;;  %v565_v25 = vld [vmem:[%s828_s1 + $0xcc] ss:$16 sps:$4 sm:$0xff]   ;;  %v567_v26 = vld [vmem:[%s828_s1 + $0xc0] ss:$16 sps:$4 sm:$0xff]  }
   0xa   :  { %v568_v27 = vld [vmem:[%s828_s1 + $0xc8] ss:$16 sps:$4 sm:$0xff]   ;;  %v569_v28 = vld [vmem:[%s828_s1 + $0xe4] ss:$16 sps:$4 sm:$0xff]   ;;  %v571_v29 = vld [vmem:[%s828_s1 + $0xec] ss:$16 sps:$4 sm:$0xff]  }
   0xb   :  { %334 = vmatpush1.bf16.msra.mxu0 %v543_v10  ;;  %387 = vmatpush1.bf16.msra.mxu1 %v544_v11  ;;  %v573_v30 = vld [vmem:[%s828_s1 + $0xe0] ss:$16 sps:$4 sm:$0xff]   ;;  %v574_v31 = vld [vmem:[%s828_s1 + $0xe8] ss:$16 sps:$4 sm:$0xff]   ;;  %v575_v32 = vld [vmem:[%s828_s1 + $0x104] ss:$16 sps:$4 sm:$0xff]  }
   0xc   :  { %335 = vmatprep.subr.bf16.mxu0 %v545_v12  ;;  %388 = vmatprep.subr.bf16.mxu1 %v547_v13  ;;  %v577_v33 = vld [vmem:[%s828_s1 + $0x10c] ss:$16 sps:$4 sm:$0xff]   ;;  %v579_v34 = vld [vmem:[%s828_s1 + $0x100] ss:$16 sps:$4 sm:$0xff]   ;;  %v580_v35 = vld [vmem:[%s828_s1 + $0x108] ss:$16 sps:$4 sm:$0xff]  }
   0xd   :  { %v581_v36 = vld [vmem:[%s828_s1 + $0x124] ss:$16 sps:$4 sm:$0xff]   ;;  %v583_v37 = vld [vmem:[%s828_s1 + $0x12c] ss:$16 sps:$4 sm:$0xff]   ;;  %v585_v39 = vld [vmem:[%s828_s1 + $0x120] ss:$16 sps:$4 sm:$0xff]  }
   0xe   :  { %v601_v38 = vld [vmem:[%s829_s0 + $0x4] ss:$8 sps:$4 sm:$0xff]   ;;  %v586_v40 = vld [vmem:[%s828_s1 + $0x128] ss:$16 sps:$4 sm:$0xff]   ;;  %v591_v43 = vld [vmem:[%s828_s1 + $0x140] ss:$16 sps:$4 sm:$0xff]  }
   0xf   :  { %336 = vmatpush1.bf16.msra.mxu0 %v549_v14  ;;  %389 = vmatpush1.bf16.msra.mxu1 %v550_v15  ;;  %v587_v41 = vld [vmem:[%s828_s1 + $0x144] ss:$16 sps:$4 sm:$0xff]   ;;  %v589_v42 = vld [vmem:[%s828_s1 + $0x14c] ss:$16 sps:$4 sm:$0xff]   ;;  %v592_v44 = vld [vmem:[%s828_s1 + $0x148] ss:$16 sps:$4 sm:$0xff]  }
  0x10   :  { %337 = vmatprep.subr.bf16.mxu0 %v551_v16  ;;  %390 = vmatprep.subr.bf16.mxu1 %v553_v17  ;;  %v593_v45 = vld [vmem:[%s828_s1 + $0x164] ss:$16 sps:$4 sm:$0xff]   ;;  %v595_v46 = vld [vmem:[%s828_s1 + $0x16c] ss:$16 sps:$4 sm:$0xff]   ;;  %v597_v47 = vld [vmem:[%s828_s1 + $0x160] ss:$16 sps:$4 sm:$0xff]  }
  0x11   :  { %523 = vmatprep.mubr.msk.bf16.mxu0 %vm322_vm0, %v601_v38  ;;  %525 = vmatprep.mubr.msk.bf16.mxu1 %vm322_vm0, %v601_v38  ;;  %v598_v48 = vld [vmem:[%s828_s1 + $0x168] ss:$16 sps:$4 sm:$0xff]   ;;  %v602_v50 = vld [vmem:[%s829_s0 + $0x14] ss:$8 sps:$4 sm:$0xff]  }
  0x12   :  { %v599_v49 = vld [vmem:[%s829_s0] ss:$8 sps:$4 sm:$0xff]   ;;  %v604_v51 = vld [vmem:[%s829_s0 + $0x10] ss:$8 sps:$4 sm:$0xff]  }
  0x13   :  { %338 = vmatpush1.bf16.msra.mxu0 %v555_v18  ;;  %391 = vmatpush1.bf16.msra.mxu1 %v556_v19 }
  0x14   :  { %339 = vmatprep.subr.bf16.mxu0 %v557_v20  ;;  %392 = vmatprep.subr.bf16.mxu1 %v559_v21 }
  0x17   :  { %340 = vmatpush1.bf16.msra.mxu0 %v561_v22  ;;  %393 = vmatpush1.bf16.msra.mxu1 %v562_v23 }
  0x18   :  { %341 = vmatprep.subr.bf16.mxu0 %v563_v24  ;;  %394 = vmatprep.subr.bf16.mxu1 %v565_v25 }
  0x1b   :  { %342 = vmatpush1.bf16.msra.mxu0 %v567_v26  ;;  %395 = vmatpush1.bf16.msra.mxu1 %v568_v27 }
  0x1c   :  { %343 = vmatprep.subr.bf16.mxu0 %v569_v28  ;;  %396 = vmatprep.subr.bf16.mxu1 %v571_v29 }
  0x1f   :  { %344 = vmatpush1.bf16.msra.mxu0 %v573_v30  ;;  %397 = vmatpush1.bf16.msra.mxu1 %v574_v31 }
  0x20   :  { %345 = vmatprep.subr.bf16.mxu0 %v575_v32  ;;  %398 = vmatprep.subr.bf16.mxu1 %v577_v33 }
  0x23   :  { %346 = vmatpush1.bf16.msra.mxu0 %v579_v34  ;;  %399 = vmatpush1.bf16.msra.mxu1 %v580_v35 }
  0x24   :  { %347 = vmatprep.subr.bf16.mxu0 %v581_v36  ;;  %400 = vmatprep.subr.bf16.mxu1 %v583_v37 }
  0x27   :  { %348 = vmatpush1.bf16.msra.mxu0 %v585_v39  ;;  %401 = vmatpush1.bf16.msra.mxu1 %v586_v40 }
  0x28   :  { %349 = vmatprep.subr.bf16.mxu0 %v587_v41  ;;  %402 = vmatprep.subr.bf16.mxu1 %v589_v42 }
  0x2b   :  { %350 = vmatpush1.bf16.msra.mxu0 %v591_v43  ;;  %403 = vmatpush1.bf16.msra.mxu1 %v592_v44 }
  0x2c   :  { %351 = vmatprep.subr.bf16.mxu0 %v593_v45  ;;  %404 = vmatprep.subr.bf16.mxu1 %v595_v46 }
  0x2f   :  { %352 = vmatpush1.bf16.msra.mxu0 %v597_v47  ;;  %405 = vmatpush1.bf16.msra.mxu1 %v598_v48 }
  0x32   :  { %362 = vmatmul.mubr.bf16.vlgmr.msra.gmra.mrb[0].mxu0 %v599_v49  ;;  %415 = vmatmul.mubr.bf16.vlgmr.msra.gmra.mrb[0].mxu1 %v599_v49 }
  0x33   :  { %524 = vmatprep.mubr.msk.bf16.mxu0 %vm322_vm0, %v602_v50  ;;  %526 = vmatprep.mubr.msk.bf16.mxu1 %vm322_vm0, %v602_v50 }
  0x3a   :  { %372 = vmatmul.mubr.bf16.gmra.mrb[4].mxu0 %v604_v51  ;;  %425 = vmatmul.mubr.bf16.gmra.mrb[4].mxu1 %v604_v51 }
 0x105   :  { %v363_v52 = vpop.f32.mrb[0].mxu0  ;;  %v416_v53 = vpop.f32.mrb[0].mxu1 }
 0x106   :  { %v435_v54 = vmax.f32 %v363_v52, 0.0  ;;  %v437_v55 = vmax.f32 %v416_v53, 0.0  ;;  %v365_v56 = vpop.f32.mrb[1].mxu0  ;;  %v418_v57 = vpop.f32.mrb[1].mxu1 }
 0x107   :  { %v436_v58 = vmax.f32 %v365_v56, 0.0  ;;  %v438_v59 = vmax.f32 %v418_v57, 0.0  ;;  %v367_v60 = vpop.f32.mrb[2].mxu0  ;;  %v420_v61 = vpop.f32.mrb[2].mxu1 }
 0x108   :  { %451 = vst [vmem:[%s830_s2] sm:$0xff] %v435_v54  ;;  %453 = vst [vmem:[%s830_s2 + $0x10] sm:$0xff] %v437_v55  ;;  %v439_v62 = vmax.f32 %v367_v60, 0.0  ;;  %v441_v63 = vmax.f32 %v420_v61, 0.0  ;;  %v369_v0 = vpop.f32.mrb[3].mxu0  ;;  %v422_v1 = vpop.f32.mrb[3].mxu1 }
 0x109   :  { %452 = vst [vmem:[%s830_s2 + $0x8] sm:$0xff] %v436_v58  ;;  %454 = vst [vmem:[%s830_s2 + $0x18] sm:$0xff] %v438_v59  ;;  %v440_v2 = vmax.f32 %v369_v0, 0.0  ;;  %v442_v3 = vmax.f32 %v422_v1, 0.0 }
 0x10a   :  { %455 = vst [vmem:[%s830_s2 + $0x20] sm:$0xff] %v439_v62  ;;  %457 = vst [vmem:[%s830_s2 + $0x30] sm:$0xff] %v441_v63 }
 0x10b   :  { %456 = vst [vmem:[%s830_s2 + $0x28] sm:$0xff] %v440_v2  ;;  %458 = vst [vmem:[%s830_s2 + $0x38] sm:$0xff] %v442_v3 }
 0x10d   :  { %v373_v4 = vpop.f32.mrb[4].mxu0  ;;  %v426_v5 = vpop.f32.mrb[4].mxu1 }
 0x10e   :  { %v443_v6 = vmax.f32 %v373_v4, 0.0  ;;  %v445_v7 = vmax.f32 %v426_v5, 0.0  ;;  %v375_v8 = vpop.f32.mrb[5].mxu0  ;;  %v428_v9 = vpop.f32.mrb[5].mxu1 }
 0x10f   :  { %v444_v10 = vmax.f32 %v375_v8, 0.0  ;;  %v446_v11 = vmax.f32 %v428_v9, 0.0  ;;  %v377_v12 = vpop.f32.mrb[6].mxu0  ;;  %v430_v13 = vpop.f32.mrb[6].mxu1 }
 0x110   :  { %459 = vst [vmem:[%s830_s2 + $0x40] sm:$0xff] %v443_v6  ;;  %461 = vst [vmem:[%s830_s2 + $0x50] sm:$0xff] %v445_v7  ;;  %v447_v14 = vmax.f32 %v377_v12, 0.0  ;;  %v449_v15 = vmax.f32 %v430_v13, 0.0  ;;  %v379_v16 = vpop.f32.mrb[7].mxu0  ;;  %v432_v17 = vpop.f32.mrb[7].mxu1 }
 0x111   :  { %460 = vst [vmem:[%s830_s2 + $0x48] sm:$0xff] %v444_v10  ;;  %462 = vst [vmem:[%s830_s2 + $0x58] sm:$0xff] %v446_v11  ;;  %v448_v18 = vmax.f32 %v379_v16, 0.0  ;;  %v450_v19 = vmax.f32 %v432_v17, 0.0 }
 0x112   :  { %463 = vst [vmem:[%s830_s2 + $0x60] sm:$0xff] %v447_v14  ;;  %465 = vst [vmem:[%s830_s2 + $0x70] sm:$0xff] %v449_v15 }
 0x113   :  { %464 = vst [vmem:[%s830_s2 + $0x68] sm:$0xff] %v448_v18  ;;  %466 = vst [vmem:[%s830_s2 + $0x78] sm:$0xff] %v450_v19 }

</bundles_post_ra>
